<compile_context>
chip_gen: v7x
topology: tpu7x:2x2x1
jax: 0.10.0
libtpu: 0.0.40
codegen_flags: <defaults>
</compile_context>

<pallas_src>
import jax
import jax.numpy as jnp
from jax.experimental import pallas as pl
from jax.experimental.pallas import tpu as pltpu


def _fused_kernel(params_ref, x_ref, out_ref):
    # params layout (SMEM, f32[4]): [w1, b1, a2, c2]
    #   row 0 (conv1 branch):        y = w1 * x + b1
    #   row 1 (BN->conv2 branch):    y = a2 * x + c2   (BN folded into conv2)
    w1 = params_ref[0]
    b1 = params_ref[1]
    a2 = params_ref[2]
    c2 = params_ref[3]

    x = x_ref[...]                                        # (1, PAD)
    xb = jnp.broadcast_to(x, out_ref.shape)               # (2, PAD)

    # Per-row coefficients via a sublane-axis iota select -> one unmasked,
    # full-block store instead of two masked row stores.
    row0 = jax.lax.broadcasted_iota(jnp.int32, out_ref.shape, 0) == 0
    coef = jnp.where(row0, w1, a2)
    bias = jnp.where(row0, b1, c2)

    out_ref[...] = xb * coef + bias


@jax.jit
def model_forward(x, w1, b1, w2, b2, bn_gamma, bn_beta, bn_mean, bn_var, bn_eps):
    """x: f32[N, 1, H, W] (NCHW). Returns f32[2N, 1, H, W] == cat([conv1(x), conv2(bn(x))], dim=0)."""
    n, c, h, w = x.shape
    flat = n * c * h * w
    pad = ((flat + 127) // 128) * 128          # lane-dense, 128-multiple width

    # Fold BatchNorm (eval mode) into conv2 (fuses into this jit's dispatch):
    #   bn(x)        = (x - mean) * gamma * rsqrt(var + eps) + beta
    #   conv2(bn(x)) = w2 * bn(x) + b2 = a2 * x + c2
    inv_std = jax.lax.rsqrt(bn_var + bn_eps)
    a2 = w2 * bn_gamma * inv_std
    c2 = w2 * (bn_beta - bn_mean * bn_gamma * inv_std) + b2
    params = jnp.stack([w1, b1, a2, c2]).astype(jnp.float32)

    if x.dtype != jnp.float32:
        x = x.astype(jnp.float32)
    x_row = x.reshape(1, flat)
    x_pad = jnp.pad(x_row, ((0, 0), (0, pad - flat)))     # (1, PAD)

    out2 = pl.pallas_call(
        _fused_kernel,
        out_shape=jax.ShapeDtypeStruct((2, pad), jnp.float32),
        in_specs=[
            pl.BlockSpec(memory_space=pltpu.MemorySpace.SMEM),   # scalar params
            pl.BlockSpec(memory_space=pltpu.MemorySpace.VMEM),   # x, full block
        ],
        out_specs=pl.BlockSpec(memory_space=pltpu.MemorySpace.VMEM),
    )(params, x_pad)

    # Row 0 holds x3 for all N samples, row 1 holds x5 -> exactly cat(dim=0).
    return out2[:, :flat].reshape(2 * n, c, h, w)


def _reference(x, w1, b1, w2, b2, gamma, beta, mean, var, eps):
    x3 = x * w1 + b1
    xn = (x - mean) * jax.lax.rsqrt(var + eps) * gamma + beta
    x5 = xn * w2 + b2
    return jnp.concatenate([x3, x5], axis=0)


if __name__ == "__main__":
    key = jax.random.PRNGKey(0)
    k_x, k_w1, k_b1, k_w2, k_b2 = jax.random.split(key, 5)

    # Input consistent with the module: x1 = torch.randn(3, 1, 2, 2)
    x1 = jax.random.normal(k_x, (3, 1, 2, 2), dtype=jnp.float32)

    # Deterministic parameter init (Conv2d(1,1,1): fan_in = 1 -> U(-1, 1))
    w1 = jax.random.uniform(k_w1, (), minval=-1.0, maxval=1.0, dtype=jnp.float32)
    b1 = jax.random.uniform(k_b1, (), minval=-1.0, maxval=1.0, dtype=jnp.float32)
    w2 = jax.random.uniform(k_w2, (), minval=-1.0, maxval=1.0, dtype=jnp.float32)
    b2 = jax.random.uniform(k_b2, (), minval=-1.0, maxval=1.0, dtype=jnp.float32)
    # BatchNorm2d(1) defaults: gamma=1, beta=0, running_mean=0, running_var=1, eps=1e-5
    bn_gamma = jnp.float32(1.0)
    bn_beta = jnp.float32(0.0)
    bn_mean = jnp.float32(0.0)
    bn_var = jnp.float32(1.0)
    bn_eps = jnp.float32(1e-5)

    out = model_forward(x1, w1, b1, w2, b2, bn_gamma, bn_beta, bn_mean, bn_var, bn_eps)
    jax.block_until_ready(out)

    ref = _reference(x1, w1, b1, w2, b2, bn_gamma, bn_beta, bn_mean, bn_var, bn_eps)
    assert out.shape == (6, 1, 2, 2), out.shape
    assert jnp.allclose(out, ref, atol=1e-5, rtol=1e-5), "mismatch vs reference"

    print("KERNEL_OK")
</pallas_src>

<mosaic_0001>
module attributes {stable_mosaic.version = 11 : i64} {
  func.func @_fused_kernel(%arg0: memref<4xf32, #tpu.memory_space<smem>>, %arg1: memref<1x128xf32, #tpu.memory_space<vmem>>, %arg2: memref<2x128xf32, #tpu.memory_space<vmem>>) attributes {dimension_semantics = [], scalar_prefetch = 0 : i64, scratch_operands = 0 : i64, tpu.core_type = #tpu.core_type<tc>} {
    %c0 = arith.constant 0 : index
    %0 = memref.load %arg0[%c0] : memref<4xf32, #tpu.memory_space<smem>>
    %c1 = arith.constant 1 : index
    %1 = memref.load %arg0[%c1] : memref<4xf32, #tpu.memory_space<smem>>
    %c2 = arith.constant 2 : index
    %2 = memref.load %arg0[%c2] : memref<4xf32, #tpu.memory_space<smem>>
    %c3 = arith.constant 3 : index
    %3 = memref.load %arg0[%c3] : memref<4xf32, #tpu.memory_space<smem>>
    %c0_0 = arith.constant 0 : index
    %c0_1 = arith.constant 0 : index
    %4 = vector.load %arg1[%c0_0, %c0_1] : memref<1x128xf32, #tpu.memory_space<vmem>>, vector<1x128xf32>
    %5 = vector.shape_cast %4 : vector<1x128xf32> to vector<1x128xf32>
    %6 = vector.broadcast %5 : vector<1x128xf32> to vector<2x128xf32>
    %7 = tpu.iota {dimensions = array<i32: 0>} : vector<2x128xi32>
    %c0_i32 = arith.constant 0 : i32
    %8 = vector.broadcast %c0_i32 : i32 to vector<2x128xi32>
    %9 = arith.cmpi eq, %7, %8 : vector<2x128xi32>
    %10 = vector.broadcast %0 : f32 to vector<2x128xf32>
    %11 = vector.broadcast %2 : f32 to vector<2x128xf32>
    %12 = arith.select %9, %10, %11 : vector<2x128xi1>, vector<2x128xf32>
    %13 = vector.broadcast %1 : f32 to vector<2x128xf32>
    %14 = vector.broadcast %3 : f32 to vector<2x128xf32>
    %15 = arith.select %9, %13, %14 : vector<2x128xi1>, vector<2x128xf32>
    %16 = arith.mulf %6, %12 : vector<2x128xf32>
    %17 = arith.addf %16, %15 : vector<2x128xf32>
    %c0_2 = arith.constant 0 : index
    %c0_3 = arith.constant 0 : index
    %18 = vector.load %arg2[%c0_2, %c0_3] : memref<2x128xf32, #tpu.memory_space<vmem>>, vector<2x128xf32>
    tpu.vector_store %arg2[%c0_2, %c0_3], %17 {strides = array<i32>} : memref<2x128xf32, #tpu.memory_space<vmem>>, vector<2x128xf32>,
    return
  }
}

</mosaic_0001>

<bundles_post_ra>
// kernel: model_forward.1
= control target key start
LH: loop header
LB: loop body
LE: loop exit
PB: predicated region body
PF: predicated region fallthrough
CT: control target
= control target key end

     0   :  { %7 = vsyncpa [#allocation3], 0  ;;  %s96_s0 = inlined_call_operand.vmem [shape: f32[4], index: 0, kind: input, shape index: {}]   ;;  %s97_s1 = inlined_call_operand.vmem [shape: f32[1,128], index: 1, kind: input, shape index: {}]   ;;  %s98_s2 = inlined_call_operand.vmem [shape: f32[2,128], index: 2, kind: output, shape index: {}]  }
   0x1   :  { %s14_s11 = sshll.u32 %s96_s0, 4  ;;  %s15_s11 = int_to_ptr.vmem [resolvable:$true] %s14_s11 }
   0x2   :  { %s57_s12 = scalar_lea.vmem %s15_s11, 16  ;;  %p62_p1 = scmp.lt.s32.totalorder %s15_s11, %s15_s11 }
   0x3   :  { %p58_p0 = scmp.ne.s32.totalorder %s15_s11, %s57_s12  ;;  %p63_p2 = scmp.lt.s32.totalorder %s57_s12, %s57_s12 }
   0x5   :  { %p64_p3 = por %p63_p2, %p62_p1 }
   0x7   :  { %p65_p4 = pnand %p64_p3, %p58_p0 }
   0x9   :  { %68 = shalt.err (!%p65_p4)
}
   0xa   :  { %s71_s13 = smov [#allocation2]  }
   0xb   :  { %17 = dma.vmem_to_smem %s15_s11, 16, %s71_s13, [#allocation3]  }
   0xc   :  { %69 = dma.done.wait [#allocation3], 16  }
   0xd   :  { %70 = vsyncadd [#allocation3], 4294967280 }
   0xe   :  { %23 = sfence }
   0xf   :  { %s24_s14 = sld [smem:[#allocation2]]  ;;  %s52_s15 = sld [smem:[#allocation2 + $0x1]]  ;;  %v35_v0 = vlaneseq  ;;  %v55_v2 = vld [vmem:[%s97_s1] ss:$0 sm:$0xff] }
  0x10   :  { %s53_s16 = sld [smem:[#allocation2 + $0x2]]  ;;  %s54_s17 = sld [smem:[#allocation2 + $0x3]] }
  0x11   :  { %v36_v1 = vshrl.u32 %v35_v0, 7 }
  0x13   :  { %vm37_vm0 = vcmp.eq.s32.totalorder %v36_v1, 0 }
  0x15   :  { %v38_v3 = vstv %s24_s14  ;;  %v41_v4 = vstv %s52_s15 }
  0x16   :  { %v39_v5 = vstv %s53_s16  ;;  %v42_v6 = vstv %s54_s17 }
  0x17   :  { %v40_v7 = vsel %vm37_vm0, %v38_v3, %v39_v5  ;;  %v43_v8 = vsel %vm37_vm0, %v41_v4, %v42_v6 }
  0x18   :  { %v44_v9 = vmul.f32 %v55_v2, %v40_v7 }
  0x1a   :  { %v45_v10 = vadd.f32 %v44_v9, %v43_v8 }
  0x1c   :  { %46 = vst [vmem:[%s98_s2] sm:$0x3] %v45_v10 }
  0x1d   :  { %51 = vsyncpa [#allocation3], 1 }

</bundles_post_ra>
